<compile_context>
chip_gen: v7x
topology: tpu7x:2x2x1
jax: 0.10.0
libtpu: 0.0.40
codegen_flags: <defaults>
</compile_context>

<pallas_src>
import functools

import jax
import jax.numpy as jnp
from jax.experimental import pallas as pl
from jax.experimental.pallas import tpu as pltpu


# ----------------------------------------------------------------------------
# helpers
# ----------------------------------------------------------------------------
def _round_up(a, b):
    return (a + b - 1) // b * b


def _vmem_estimate(cin, t_sp, ncols):
    """Bytes of VMEM for one grid step (double-buffered where Pallas does)."""
    cin_pad = _round_up(cin, 8)
    ncols_pad = _round_up(ncols, 128)
    t_pad = _round_up(t_sp, 128)
    a_bytes = 2 * cin_pad * t_pad * 4          # f32 activation tile
    w_bytes = 2 * cin_pad * ncols_pad * 2      # resident bf16 weights
    b_bytes = 2 * 8 * ncols_pad * 4            # f32 bias row (sublane padded)
    o_bytes = 2 * t_pad * ncols_pad * 2        # bf16 output tile
    return a_bytes + w_bytes + b_bytes + o_bytes


def _choose_spatial_tile(hw, cin, ncols, vmem_budget=12 * 2**20):
    """Largest 128-multiple tile of the H*W axis that divides hw and fits a
    v7x-safe VMEM budget; falls back to the full extent (always legal)."""
    if hw % 128 != 0:
        return hw
    t = 128
    for cand in (2048, 1024, 512, 256, 128):
        if hw % cand == 0 and _vmem_estimate(cin, cand, ncols) <= vmem_budget:
            t = cand
            break
    return t


# ----------------------------------------------------------------------------
# Pallas kernel:  O[T, ncols] = X[Cin, T]^T @ W[Cin, ncols] + bias[ncols]
# (f32 activations cast to bf16 in-kernel, f32 MXU accumulation, bf16 store)
# ----------------------------------------------------------------------------
def _upsample_mm_kernel(x_ref, w_ref, b_ref, o_ref):
    # x_ref: [Cin, T]            f32  (NCHW-native slice, contiguous over H*W)
    # w_ref: [Cin, kh*kw*Cout]   bf16 (resident)
    # b_ref: [1,   kh*kw*Cout]   f32  (resident)
    # o_ref: [T,   kh*kw*Cout]   bf16
    a = x_ref[...].astype(jnp.bfloat16)
    acc = jax.lax.dot_general(
        a, w_ref[...],
        dimension_numbers=(((0,), (0,)), ((), ())),   # contract over Cin
        preferred_element_type=jnp.float32)
    o_ref[...] = (acc + b_ref[...]).astype(o_ref.dtype)


# ----------------------------------------------------------------------------
# ConvTranspose2d (kernel == stride, padding = 0) built on the kernel
# ----------------------------------------------------------------------------
def conv_transpose2d(x_nchw, w, b, *, kernel, stride):
    """PyTorch-semantics ConvTranspose2d forward.

    x_nchw : [N, Cin, H, W]
    w      : [Cin, Cout, kh, kw]   (PyTorch ConvTranspose2d layout)
    b      : [Cout]
    """
    assert kernel == stride, "only the non-overlapping (kernel == stride) case"
    # TODO(synk): general kernel != stride (overlapping taps / output padding)
    #             has no clean single-matmul form and is not implemented.
    n, cin, h, wd = x_nchw.shape
    cout = w.shape[1]
    kh = kw = kernel
    hw = h * wd
    ncols = kh * kw * cout

    # Activations: free reshape of NCHW (no HBM transpose); Cin stays the
    # leading (contraction) dim of every block.
    x3 = x_nchw.reshape(n, cin, hw)

    # Weights [Cin, Cout, kh, kw] -> [Cin, (kh, kw, Cout)]: matmul columns are
    # already the per-pixel (r, c, cout) block. Tiny; cast to bf16 up front.
    wm = jnp.transpose(w, (0, 2, 3, 1)).reshape(cin, ncols).astype(jnp.bfloat16)
    bias_row = jnp.tile(b, kh * kw).reshape(1, ncols).astype(jnp.float32)

    t_sp = _choose_spatial_tile(hw, cin, ncols)
    grid = (n, hw // t_sp)
    est = _vmem_estimate(cin, t_sp, ncols)
    vmem_limit = int(min(max(4 * est, 16 * 2**20), 64 * 2**20))

    y = pl.pallas_call(
        _upsample_mm_kernel,
        out_shape=jax.ShapeDtypeStruct((n, hw, ncols), jnp.bfloat16),
        grid_spec=pltpu.PrefetchScalarGridSpec(
            num_scalar_prefetch=0,
            grid=grid,
            in_specs=[
                # activations: [Cin, t_sp] slice of batch `bi`
                pl.BlockSpec((pl.Squeezed(), cin, t_sp),
                             lambda bi, i: (bi, 0, i)),
                # weights: resident, fetched once
                pl.BlockSpec((cin, ncols), lambda bi, i: (0, 0)),
                # bias: resident, fetched once
                pl.BlockSpec((1, ncols), lambda bi, i: (0, 0)),
            ],
            out_specs=pl.BlockSpec((pl.Squeezed(), t_sp, ncols),
                                   lambda bi, i: (bi, i, 0)),
        ),
        compiler_params=pltpu.CompilerParams(
            dimension_semantics=("parallel", "parallel"),
            vmem_limit_bytes=vmem_limit),
    )(x3, wm, bias_row)

    # Pixel shuffle + NHWC->NCHW + cast back to f32: one XLA pass over the
    # bf16 kernel output (half the traffic of the previous f32 shuffle).
    y = y.reshape(n, h, wd, kh, kw, cout)
    y = jnp.transpose(y, (0, 5, 1, 3, 2, 4)).reshape(n, cout, h * kh, wd * kw)
    return y.astype(jnp.float32)


# ----------------------------------------------------------------------------
# main
# ----------------------------------------------------------------------------
if __name__ == "__main__":
    key = jax.random.PRNGKey(0)
    k_x, k_w, k_b = jax.random.split(key, 3)

    # Small shapes consistent with the module; Cout chosen so the matmul's
    # column dim (kh*kw*Cout = 128) is lane-dense with zero padding.
    in_channels, out_channels, kernel, stride = 32, 32, 2, 2
    N, H, W = 2, 16, 16

    x = jax.random.normal(k_x, (N, in_channels, H, W), jnp.float32)
    w = 0.1 * jax.random.normal(
        k_w, (in_channels, out_channels, kernel, kernel), jnp.float32)
    b = 0.1 * jax.random.normal(k_b, (out_channels,), jnp.float32)

    fwd = jax.jit(functools.partial(conv_transpose2d, kernel=kernel, stride=stride))
    y = jax.block_until_ready(fwd(x, w, b))

    assert y.shape == (N, out_channels, H * stride, W * stride), y.shape
    assert y.dtype == jnp.float32
    assert bool(jnp.all(jnp.isfinite(y)))

    # Pure-JAX f32 reference (ConvTranspose2d, kernel == stride, padding = 0).
    ref = jnp.einsum('nihw,iojk->nohjwk', x, w).reshape(
        N, out_channels, H * kernel, W * kernel) + b[None, :, None, None]
    max_err = float(jnp.max(jnp.abs(y - ref)))
    assert max_err < 1e-1, max_err  # bf16 operands / bf16 kernel output

    print("KERNEL_OK")
</pallas_src>

<mosaic_0001>
module attributes {stable_mosaic.version = 11 : i64} {
  func.func @_upsample_mm_kernel(%arg0: i32, %arg1: i32, %arg2: memref<1x32x256xf32, #tpu.memory_space<vmem>>, %arg3: memref<32x128xbf16, #tpu.memory_space<vmem>>, %arg4: memref<1x128xf32, #tpu.memory_space<vmem>>, %arg5: memref<1x256x128xbf16, #tpu.memory_space<vmem>>) attributes {dimension_semantics = [#tpu.dimension_semantics<parallel>, #tpu.dimension_semantics<parallel>], iteration_bounds = array<i64: 2, 1>, scalar_prefetch = 0 : i64, scratch_operands = 0 : i64, tpu.core_type = #tpu.core_type<tc>, window_params = [{transform_indices = @transform_0, window_bounds = array<i64: 1, 32, 256>}, {pipeline_mode = #tpu.pipeline_mode<synchronous>, transform_indices = @transform_1, window_bounds = array<i64: 32, 128>}, {pipeline_mode = #tpu.pipeline_mode<synchronous>, transform_indices = @transform_2, window_bounds = array<i64: 1, 128>}, {transform_indices = @transform_3, window_bounds = array<i64: 1, 256, 128>}]} {
    %c0 = arith.constant 0 : index
    %c0_0 = arith.constant 0 : index
    %c0_1 = arith.constant 0 : index
    %0 = vector.load %arg2[%c0, %c0_0, %c0_1] : memref<1x32x256xf32, #tpu.memory_space<vmem>>, vector<1x32x256xf32>
    %1 = vector.shape_cast %0 : vector<1x32x256xf32> to vector<32x256xf32>
    %2 = arith.truncf %1 : vector<32x256xf32> to vector<32x256xbf16>
    %c0_2 = arith.constant 0 : index
    %c0_3 = arith.constant 0 : index
    %3 = vector.load %arg3[%c0_2, %c0_3] : memref<32x128xbf16, #tpu.memory_space<vmem>>, vector<32x128xbf16>
    %cst = arith.constant dense<0.000000e+00> : vector<256x128xf32>
    %4 = tpu.matmul %2, %3, %cst {dimension_numbers = #tpu.dot_dimension_numbers<[0], [0], [1], [1], [0, 1, 1, 1], [], []>} : vector<32x256xbf16>, vector<32x128xbf16>, vector<256x128xf32> -> vector<256x128xf32>
    %c0_4 = arith.constant 0 : index
    %c0_5 = arith.constant 0 : index
    %5 = vector.load %arg4[%c0_4, %c0_5] : memref<1x128xf32, #tpu.memory_space<vmem>>, vector<1x128xf32>
    %6 = vector.broadcast %5 : vector<1x128xf32> to vector<256x128xf32>
    %7 = arith.addf %4, %6 : vector<256x128xf32>
    %8 = arith.truncf %7 : vector<256x128xf32> to vector<256x128xbf16>
    %c0_6 = arith.constant 0 : index
    %c0_7 = arith.constant 0 : index
    %c0_8 = arith.constant 0 : index
    %9 = vector.load %arg5[%c0_6, %c0_7, %c0_8] : memref<1x256x128xbf16, #tpu.memory_space<vmem>>, vector<1x256x128xbf16>
    %10 = vector.shape_cast %9 : vector<1x256x128xbf16> to vector<256x128xbf16>
    %11 = vector.shape_cast %8 : vector<256x128xbf16> to vector<1x256x128xbf16>
    tpu.vector_store %arg5[%c0_6, %c0_7, %c0_8], %11 {strides = array<i32>} : memref<1x256x128xbf16, #tpu.memory_space<vmem>>, vector<1x256x128xbf16>,
    return
  }
  func.func @transform_0(%arg0: i32, %arg1: i32) -> (i32, i32, i32) {
    %c0_i32 = arith.constant 0 : i32
    %c0_i32_0 = arith.constant 0 : i32
    return %arg0, %c0_i32, %arg1 : i32, i32, i32
  }
  func.func @transform_1(%arg0: i32, %arg1: i32) -> (i32, i32) {
    %c0_i32 = arith.constant 0 : i32
    %c0_i32_0 = arith.constant 0 : i32
    %c0_i32_1 = arith.constant 0 : i32
    return %c0_i32, %c0_i32_0 : i32, i32
  }
  func.func @transform_2(%arg0: i32, %arg1: i32) -> (i32, i32) {
    %c0_i32 = arith.constant 0 : i32
    %c0_i32_0 = arith.constant 0 : i32
    %c0_i32_1 = arith.constant 0 : i32
    return %c0_i32, %c0_i32_0 : i32, i32
  }
  func.func @transform_3(%arg0: i32, %arg1: i32) -> (i32, i32, i32) {
    %c0_i32 = arith.constant 0 : i32
    %c0_i32_0 = arith.constant 0 : i32
    return %arg0, %arg1, %c0_i32 : i32, i32, i32
  }
}

</mosaic_0001>

<bundles_post_ra>
// kernel: tile.9
= control target key start
LH: loop header
LB: loop body
LE: loop exit
PB: predicated region body
PF: predicated region fallthrough
CT: control target
= control target key end

     0   :  { %vm7_vm0 = vcmask 261120   ;;  %s37_s8 = smov 32   ;;  %s38_s9 = smov 64   ;;  %vm13_vm1 = vcmask 1048320   ;;  %vm19_vm2 = vcmask 785920   ;;  %vm25_vm3 = vcmask 523520   ;;  %s55_s0 = inlined_call_operand.vmem [shape: f32[4,32], index: 0, kind: input, shape index: {}]   ;;  %s56_s1 = inlined_call_operand.vmem [shape: f32[1,128], index: 1, kind: output, shape index: {}]  }
   0x1   :  { %v4_v0 = vld [vmem:[%s55_s0] sm:$0xf]  ;;  %s36_s0 = smov 96  }
   0x2   :  { %5 = vst [vmem:[#allocation1] sm:$0xf] %v4_v0 }
   0x9   :  { %v10_v1 = vld [vmem:[#allocation1 + $0x3] sm:$0x1]   ;;  %v22_v2 = vld [vmem:[#allocation1 + $0x1] sm:$0x1]   ;;  %v6_v3 = vld [vmem:[#allocation1] sm:$0x1]  }
   0xa   :  { %11 = vrot.lane.b32.xlu0 %v10_v1, %s36_s0  ;;  %23 = vrot.lane.b32.xlu1 %v22_v2, %s37_s8  ;;  %v16_v4 = vld [vmem:[#allocation1 + $0x2] sm:$0x1]   ;;  %8 = vst.msk [vmem:[#allocation0] sm:$0x1] %vm7_vm0, %v6_v3  }
   0xe   :  { %17 = vrot.lane.b32.xlu0 %v16_v4, %s38_s9 }
  0x7c   :  { %v12_v5 = vpop.permute.xlu0 %11   ;;  %v24_v6 = vpop.permute.xlu1 %23  }
  0x7d   :  { %14 = vst.msk [vmem:[#allocation0] sm:$0x1] %vm13_vm1, %v12_v5  }
  0x80   :  { %v18_v7 = vpop.permute.xlu0 %17  }
  0x81   :  { %20 = vst.msk [vmem:[#allocation0] sm:$0x1] %vm19_vm2, %v18_v7  }
  0x82   :  { %26 = vst.msk [vmem:[#allocation0] sm:$0x1] %vm25_vm3, %v24_v6  }
  0x89   :  { %v30_v8 = vld [vmem:[#allocation0] sm:$0x1] }
  0x8a   :  { %32 = vst [vmem:[%s56_s1] sm:$0x1] %v30_v8 }

// kernel: tile.8
= control target key start
LH: loop header
LB: loop body
LE: loop exit
PB: predicated region body
PF: predicated region fallthrough
CT: control target
= control target key end

     0   :  { %s22_s0 = inlined_call_operand.vmem [shape: f32[32], index: 0, kind: input, shape index: {}]   ;;  %s23_s1 = inlined_call_operand.vmem [shape: f32[4,32], index: 1, kind: output, shape index: {}]  }
   0x1   :  { %v4_v0 = vld [vmem:[%s22_s0] ss:$0 sm:$0xff] }
   0x2   :  { %5 = vst [vmem:[%s23_s1] sm:$0xf] %v4_v0 }

// kernel: conv_transpose2d.1
= control target key start
LH: loop header
LB: loop body
LE: loop exit
PB: predicated region body
PF: predicated region fallthrough
CT: control target
= control target key end

     0   :  { %s1055_s12 = smov 0   ;;  %s1057_s13 = smov 0   ;;  %s1169_s0 = inlined_call_operand.vmem [shape: f32[2,32,256], index: 0, kind: input, shape index: {}]   ;;  %s1170_s1 = inlined_call_operand.vmem [shape: bf16[32,128], index: 1, kind: input, shape index: {}]   ;;  %s1171_s2 = inlined_call_operand.vmem [shape: f32[1,128], index: 2, kind: input, shape index: {}]   ;;  %s1172_s3 = inlined_call_operand.vmem [shape: bf16[2,256,128], index: 3, kind: output, shape index: {}]  }
   0x1   :  { %s1059_s14 = smov 0  }
   0x2 LB: > { %s25_s15 = sadd.s32 1, %s1029_s13  ;;  %p739_p0 = scmp.ge.s32.totalorder %s1033_s14, 1  ;;  %s1033_s14 = sphi %s1059_s14, %s13_s14   ;;  %s1029_s13 = sphi %s1057_s13, %s1174_s13   ;;  %s1025_s12 = sphi %s1055_s12, %s1173_s12  }
   0x3   : > { %p27_p1 = scmp.ge.s32.totalorder %s25_s15, 2  ;;  %p158_p2 = scmp.lt.s32.totalorder %s1033_s14, 3 }
   0x5   : > { %s1176_s15 = smov (%p27_p1, %s25_s15), 0  ;;  %p159_p3 = pnand %p739_p0, %p158_p2 }
   0x6   : > { %p191_p4 = scmp.lt.s32.totalorder (!%p159_p3), %s1025_s12, 1  ;;  %v1009_v0 = vld [vmem:[%s1170_s1] sm:$0xff] (!%p159_p3)   ;;  %v1010_v1 = vld [vmem:[%s1170_s1 + $0x8] sm:$0xff] (!%p159_p3)   ;;  %vm278_vm0 = vcmask (!%p159_p3), 261120  }
   0x7   : > { %162 = sbr.rel (%p159_p3) target bundleno = 372 (0x174), region = 32  ;;  %944 = vmatprep.subr.bf16.mxu0 (!%p159_p3), %v1009_v0  ;;  %980 = vmatprep.subr.bf16.mxu1 (!%p159_p3), %v1009_v0  ;;  %v1104_v30 = vld [vmem:[%s1171_s2] ss:$0 sm:$0xff] (!%p159_p3) }
   0x8   : > { %945 = vmatpush3.bf16.msra.mxu0 (!%p159_p3), %v1009_v0  ;;  %982 = vmatpush3.bf16.msra.mxu1 (!%p159_p3), %v1009_v0 }
   0x9   : > { %946 = vmatprep.subr.bf16.mxu0 (!%p159_p3), %v1010_v1  ;;  %981 = vmatprep.subr.bf16.mxu1 (!%p159_p3), %v1010_v1 }
   0xc   : > { %947 = vmatpush3.bf16.msra.mxu0 (!%p159_p3), %v1010_v1  ;;  %983 = vmatpush3.bf16.msra.mxu1 (!%p159_p3), %v1010_v1 }
   0xe   : > { %s1178_s12 = smov (!%p191_p4, %s1025_s12), 1 }
   0xf   : > { %s797_s20 = sshll.u32 %s1178_s12, 6  ;;  %s798_s26 = sshll.u32 %s1178_s12, 7 }
  0x10   : > { %s198_s23 = scalar_lea.vmem %s1169_s0, %s797_s20  ;;  %s1112_s29 = scalar_lea.vmem %s1172_s3, %s798_s26 }
  0x11   : > { %v212_v2 = vld [vmem:[%s198_s23 + $0x8] sm:$0xff]  ;;  %v214_v3 = vld [vmem:[%s198_s23 + $0x18] sm:$0xff]  ;;  %v211_v4 = vld [vmem:[%s198_s23] sm:$0xff] }
  0x12   : > { %v220_v5 = vpack.c.bf16 %v214_v3, %v212_v2  ;;  %v213_v6 = vld [vmem:[%s198_s23 + $0x10] sm:$0xff]  ;;  %v216_v7 = vld [vmem:[%s198_s23 + $0x28] sm:$0xff]  ;;  %v218_v8 = vld [vmem:[%s198_s23 + $0x38] sm:$0xff] }
  0x13   : > { %v219_v9 = vpack.c.bf16 %v213_v6, %v211_v4  ;;  %v215_v10 = vld [vmem:[%s198_s23 + $0x20] sm:$0xff]  ;;  %v217_v11 = vld [vmem:[%s198_s23 + $0x30] sm:$0xff]  ;;  %v222_v12 = vpack.c.bf16 %v218_v8, %v216_v7 }
  0x14   : > { %250 = vxpose.xlu1.c.b16.start [1/2] (short) %v220_v5, 128  ;;  %v221_v13 = vpack.c.bf16 %v217_v11, %v215_v10 }
  0x15   : > { %234 = vxpose.xlu0.c.b16.start [1/2] (short) %v219_v9, 128 }
  0x18   : > { %251 = vxpose.xlu1.c.b16.end [2/2] (short) %v222_v12, 128 }
  0x19   : > { %235 = vxpose.xlu0.c.b16.end [2/2] (short) %v221_v13, 128 }
  0x7a   : > { %v258_v14 = vpop.trf.xlu1 }
  0x7b   : > { %v242_v15 = vpop.trf.xlu0  ;;  %964 = vmatprep.mubr.msk.bf16.mxu1 %vm278_vm0, %v258_v14 }
  0x7c   : > { %948 = vmatprep.mubr.msk.bf16.mxu0 %vm278_vm0, %v242_v15 }
  0x7e   : > { %v259_v16 = vpop.trf.xlu1 }
  0x7f   : > { %v243_v17 = vpop.trf.xlu0  ;;  %965 = vmatmul.mubr.msk.bf16.vlgmr.msra.gmra.mrb[0].mxu1 %vm278_vm0, %v259_v16 }
  0x80   : > { %949 = vmatmul.mubr.msk.bf16.vlgmr.msra.gmra.mrb[0].mxu0 %vm278_vm0, %v243_v17 }
  0x82   : > { %v260_v18 = vpop.trf.xlu1 }
  0x83   : > { %v244_v19 = vpop.trf.xlu0  ;;  %968 = vmatprep.mubr.msk.bf16.mxu1 %vm278_vm0, %v260_v18 }
  0x84   : > { %952 = vmatprep.mubr.msk.bf16.mxu0 %vm278_vm0, %v244_v19 }
  0x86   : > { %v261_v20 = vpop.trf.xlu1 }
  0x87   : > { %v245_v21 = vpop.trf.xlu0  ;;  %969 = vmatmul.mubr.msk.bf16.gmra.mrb[4].mxu1 %vm278_vm0, %v261_v20 }
  0x88   : > { %953 = vmatmul.mubr.msk.bf16.gmra.mrb[4].mxu0 %vm278_vm0, %v245_v21 }
  0x8a   : > { %v262_v22 = vpop.trf.xlu1 }
  0x8b   : > { %v246_v23 = vpop.trf.xlu0  ;;  %972 = vmatprep.mubr.msk.bf16.mxu1 %vm278_vm0, %v262_v22 }
  0x8c   : > { %956 = vmatprep.mubr.msk.bf16.mxu0 %vm278_vm0, %v246_v23 }
  0x8e   : > { %v263_v24 = vpop.trf.xlu1 }
  0x8f   : > { %v247_v25 = vpop.trf.xlu0  ;;  %973 = vmatmul.mubr.msk.bf16.gmra.mrb[8].mxu1 %vm278_vm0, %v263_v24 }
  0x90   : > { %957 = vmatmul.mubr.msk.bf16.gmra.mrb[8].mxu0 %vm278_vm0, %v247_v25 }
  0x92   : > { %v264_v26 = vpop.trf.xlu1 }
  0x93   : > { %v248_v27 = vpop.trf.xlu0  ;;  %976 = vmatprep.mubr.msk.bf16.mxu1 %vm278_vm0, %v264_v26 }
  0x94   : > { %960 = vmatprep.mubr.msk.bf16.mxu0 %vm278_vm0, %v248_v27 }
  0x96   : > { %v265_v28 = vpop.trf.xlu1 }
  0x97   : > { %v249_v29 = vpop.trf.xlu0  ;;  %977 = vmatmul.mubr.msk.bf16.gmra.mrb[12].mxu1 %vm278_vm0, %v265_v28 }
  0x98   : > { %961 = vmatmul.mubr.msk.bf16.gmra.mrb[12].mxu0 %vm278_vm0, %v249_v29 }
 0x152   : > { %v966_v31 = vpop.f32.mrb[0].mxu1 }
 0x153   : > { %v950_v32 = vpop.f32.mrb[0].mxu0  ;;  %v425_v33 = vpop.f32.mrb[1].mxu1  ;;  %v434_v36 = vadd.f32 %v966_v31, %v1104_v30 }
 0x154   : > { %v361_v34 = vpop.f32.mrb[1].mxu0  ;;  %v967_v35 = vpop.f32.mrb[2].mxu1  ;;  %v370_v40 = vadd.f32 %v950_v32, %v1104_v30  ;;  %v426_v41 = vadd.f32 %v1104_v30, %v425_v33 }
 0x155   : > { %v951_v37 = vpop.f32.mrb[2].mxu0  ;;  %v437_v38 = vadd.f32 %v967_v35, %v1104_v30  ;;  %v428_v39 = vpop.f32.mrb[3].mxu1  ;;  %v362_v45 = vadd.f32 %v1104_v30, %v361_v34 }
 0x156   : > { %v373_v42 = vadd.f32 %v951_v37, %v1104_v30  ;;  %v364_v43 = vpop.f32.mrb[3].mxu0  ;;  %v429_v44 = vadd.f32 %v1104_v30, %v428_v39 }
 0x157   : > { %v879_v46 = vpack.c.bf16 %v437_v38, %v434_v36  ;;  %v365_v47 = vadd.f32 %v1104_v30, %v364_v43 }
 0x158   : > { %v839_v48 = vpack.c.bf16 %v373_v42, %v370_v40  ;;  %v874_v49 = vpack.c.bf16 %v429_v44, %v426_v41 }
 0x159   : > { %919 = vst [vmem:[%s1112_s29 + $0x48] sm:$0xff] %v879_v46   ;;  %v834_v50 = vpack.c.bf16 %v365_v47, %v362_v45 }
 0x15a   : > { %911 = vst [vmem:[%s1112_s29 + $0x8] sm:$0xff] %v839_v48   ;;  %918 = vst [vmem:[%s1112_s29 + $0x40] sm:$0xff] %v874_v49   ;;  %v970_v51 = vpop.f32.mrb[4].mxu1 }
 0x15b   : > { %835 = vst [vmem:[%s1112_s29] sm:$0xff] %v834_v50   ;;  %v954_v52 = vpop.f32.mrb[4].mxu0  ;;  %v441_v53 = vpop.f32.mrb[5].mxu1  ;;  %v450_v56 = vadd.f32 %v970_v51, %v1104_v30 }
 0x15c   : > { %v377_v54 = vpop.f32.mrb[5].mxu0  ;;  %v971_v55 = vpop.f32.mrb[6].mxu1  ;;  %v386_v60 = vadd.f32 %v954_v52, %v1104_v30  ;;  %v442_v61 = vadd.f32 %v1104_v30, %v441_v53 }
 0x15d   : > { %v955_v57 = vpop.f32.mrb[6].mxu0  ;;  %v453_v58 = vadd.f32 %v971_v55, %v1104_v30  ;;  %v444_v59 = vpop.f32.mrb[7].mxu1  ;;  %v378_v1 = vadd.f32 %v1104_v30, %v377_v54 }
 0x15e   : > { %v389_v62 = vadd.f32 %v955_v57, %v1104_v30  ;;  %v380_v63 = vpop.f32.mrb[7].mxu0  ;;  %v445_v0 = vadd.f32 %v1104_v30, %v444_v59 }
 0x15f   : > { %v889_v2 = vpack.c.bf16 %v453_v58, %v450_v56  ;;  %v381_v3 = vadd.f32 %v1104_v30, %v380_v63 }
 0x160   : > { %v849_v4 = vpack.c.bf16 %v389_v62, %v386_v60  ;;  %v884_v5 = vpack.c.bf16 %v445_v0, %v442_v61 }
 0x161   : > { %921 = vst [vmem:[%s1112_s29 + $0x58] sm:$0xff] %v889_v2   ;;  %v844_v6 = vpack.c.bf16 %v381_v3, %v378_v1 }
 0x162   : > { %913 = vst [vmem:[%s1112_s29 + $0x18] sm:$0xff] %v849_v4   ;;  %920 = vst [vmem:[%s1112_s29 + $0x50] sm:$0xff] %v884_v5   ;;  %v974_v7 = vpop.f32.mrb[8].mxu1 }
 0x163   : > { %912 = vst [vmem:[%s1112_s29 + $0x10] sm:$0xff] %v844_v6   ;;  %v958_v8 = vpop.f32.mrb[8].mxu0  ;;  %v457_v9 = vpop.f32.mrb[9].mxu1  ;;  %v466_v12 = vadd.f32 %v974_v7, %v1104_v30 }
 0x164   : > { %v393_v10 = vpop.f32.mrb[9].mxu0  ;;  %v975_v11 = vpop.f32.mrb[10].mxu1  ;;  %v402_v16 = vadd.f32 %v958_v8, %v1104_v30  ;;  %v458_v17 = vadd.f32 %v1104_v30, %v457_v9 }
 0x165   : > { %v959_v13 = vpop.f32.mrb[10].mxu0  ;;  %v469_v14 = vadd.f32 %v975_v11, %v1104_v30  ;;  %v460_v15 = vpop.f32.mrb[11].mxu1  ;;  %v394_v21 = vadd.f32 %v1104_v30, %v393_v10 }
 0x166   : > { %v405_v18 = vadd.f32 %v959_v13, %v1104_v30  ;;  %v396_v19 = vpop.f32.mrb[11].mxu0  ;;  %v461_v20 = vadd.f32 %v1104_v30, %v460_v15 }
 0x167   : > { %v899_v22 = vpack.c.bf16 %v469_v14, %v466_v12  ;;  %v397_v23 = vadd.f32 %v1104_v30, %v396_v19 }
 0x168   : > { %v859_v24 = vpack.c.bf16 %v405_v18, %v402_v16  ;;  %v894_v25 = vpack.c.bf16 %v461_v20, %v458_v17 }
 0x169   : > { %923 = vst [vmem:[%s1112_s29 + $0x68] sm:$0xff] %v899_v22   ;;  %v854_v26 = vpack.c.bf16 %v397_v23, %v394_v21 }
 0x16a   : > { %915 = vst [vmem:[%s1112_s29 + $0x28] sm:$0xff] %v859_v24   ;;  %922 = vst [vmem:[%s1112_s29 + $0x60] sm:$0xff] %v894_v25   ;;  %v978_v27 = vpop.f32.mrb[12].mxu1 }
 0x16b   : > { %914 = vst [vmem:[%s1112_s29 + $0x20] sm:$0xff] %v854_v26   ;;  %v962_v28 = vpop.f32.mrb[12].mxu0  ;;  %v473_v29 = vpop.f32.mrb[13].mxu1  ;;  %v482_v33 = vadd.f32 %v978_v27, %v1104_v30 }
 0x16c   : > { %v409_v31 = vpop.f32.mrb[13].mxu0  ;;  %v979_v32 = vpop.f32.mrb[14].mxu1  ;;  %v418_v37 = vadd.f32 %v962_v28, %v1104_v30  ;;  %v474_v38 = vadd.f32 %v1104_v30, %v473_v29 }
 0x16d   : > { %v963_v34 = vpop.f32.mrb[14].mxu0  ;;  %v485_v35 = vadd.f32 %v979_v32, %v1104_v30  ;;  %v476_v36 = vpop.f32.mrb[15].mxu1  ;;  %v410_v42 = vadd.f32 %v1104_v30, %v409_v31 }
 0x16e   : > { %v421_v39 = vadd.f32 %v963_v34, %v1104_v30  ;;  %v412_v40 = vpop.f32.mrb[15].mxu0  ;;  %v477_v41 = vadd.f32 %v1104_v30, %v476_v36 }
 0x16f   : > { %v909_v43 = vpack.c.bf16 %v485_v35, %v482_v33  ;;  %v413_v44 = vadd.f32 %v1104_v30, %v412_v40 }
 0x170   : > { %v869_v45 = vpack.c.bf16 %v421_v39, %v418_v37  ;;  %v904_v46 = vpack.c.bf16 %v477_v41, %v474_v38 }
 0x171   : > { %925 = vst [vmem:[%s1112_s29 + $0x78] sm:$0xff] %v909_v43   ;;  %v864_v47 = vpack.c.bf16 %v413_v44, %v410_v42 }
 0x172   : > { %917 = vst [vmem:[%s1112_s29 + $0x38] sm:$0xff] %v869_v45   ;;  %924 = vst [vmem:[%s1112_s29 + $0x70] sm:$0xff] %v904_v46  }
 0x173   : > { %916 = vst [vmem:[%s1112_s29 + $0x30] sm:$0xff] %v864_v47  }
 0x174 PF: > { %s13_s14 = sadd.s32 1, %s1033_s14   ;;  %s1173_s12 = smov %s1029_s13 }
 0x175   : > { %p10_p5 = scmp.ge.s32.totalorder %s13_s14, 4   ;;  %s1174_s13 = smov %s1176_s15 }
 0x177   :  { %12 = sbr.rel (!%p10_p5) target bundleno = 2 (0x2), region = 62 }

</bundles_post_ra>
